<compile_context>
chip_gen: v5e
topology: v5e:2x2
jax: 0.10.0
libtpu: 0.0.40
codegen_flags: <defaults>
</compile_context>

<pallas_src>
import jax
import jax.numpy as jnp
import numpy as np
from jax import lax
from jax.experimental import pallas as pl
from jax.experimental.pallas import tpu as pltpu

# ---------------- problem sizes ----------------
N, CIN, H, W = 2, 4, 16, 16
HW = H * W
EXPAND = 4
CH = CIN * EXPAND      # hidden_dim = 16
COUT = CIN             # 4  (identity branch active: stride==1 and cin==cout)
EPS = 1e-5             # PyTorch BatchNorm2d default


# ---------------- Pallas kernel (one image per grid step) ----------------
def inverted_residual_kernel(x_ref, w1_ref, b1_ref, coef_ref, b2_ref,
                             w3_ref, b3_ref, o_ref):
    hw = x_ref.shape[-1]
    x = x_ref[...].astype(jnp.float32)                                  # (CIN, HW)

    # --- 1x1 expansion conv (BN scale pre-folded into w1) + bias + ReLU6 ---
    h1 = jnp.dot(w1_ref[...], x, preferred_element_type=jnp.float32)    # (CH, HW)
    h1 = jnp.clip(h1 + b1_ref[...], 0.0, 6.0)

    # --- 3x3 depthwise conv (stride 1, pad 1): center tap + 8 lane-rolls on
    #     the flat H*W axis. Zero-padding validity mask and BN scale are
    #     pre-folded into coef_ref[t] (shape (CH, HW)). ---
    acc = b2_ref[...] + h1 * coef_ref[4]                                 # center tap
    t = 0
    for ky in (-1, 0, 1):
        for kx in (-1, 0, 1):
            off = ky * W + kx
            if off != 0:
                shifted = pltpu.roll(h1, (-off) % hw, 1)                 # XLU lane rotate
                acc = acc + shifted * coef_ref[t]
            t += 1
    h2 = jnp.clip(acc, 0.0, 6.0)

    # --- 1x1 projection conv (BN folded) + bias + residual add ---
    y = jnp.dot(w3_ref[...], h2, preferred_element_type=jnp.float32)     # (COUT, HW)
    o_ref[...] = (y + b3_ref[...] + x).astype(o_ref.dtype)


def _full_spec(arr):
    zeros = (0,) * arr.ndim
    return pl.BlockSpec(arr.shape, lambda n: zeros)


# ---------------- wrapper (keeps NCHW; folds H,W -> lane-dense last dim) ----
def inverted_residual(x_nchw, params):
    n, c, h, w = x_nchw.shape
    x = x_nchw.reshape(n, c, h * w)                      # (N, CIN, HW): last dim 256
    out = pl.pallas_call(
        inverted_residual_kernel,
        out_shape=jax.ShapeDtypeStruct((n, COUT, h * w), x_nchw.dtype),
        grid=(n,),
        in_specs=[pl.BlockSpec((None, c, h * w), lambda i: (i, 0, 0))]
                 + [_full_spec(p) for p in params],
        out_specs=pl.BlockSpec((None, COUT, h * w), lambda i: (i, 0, 0)),
        compiler_params=pltpu.CompilerParams(
            dimension_semantics=("parallel",)),
    )(x, *params)
    return out.reshape(n, COUT, h, w)


# ---------------- deterministic parameter setup ----------------
def bn_fold(key, c):
    k1, k2, k3, k4 = jax.random.split(key, 4)
    gamma = 1.0 + 0.1 * jax.random.normal(k1, (c,), jnp.float32)
    beta = 0.1 * jax.random.normal(k2, (c,), jnp.float32)
    mean = 0.1 * jax.random.normal(k3, (c,), jnp.float32)
    var = jnp.abs(jax.random.normal(k4, (c,), jnp.float32)) + 0.5
    scale = gamma / jnp.sqrt(var + EPS)
    bias = beta - mean * scale
    return scale, bias


def make_params(key):
    k = jax.random.split(key, 6)
    # PyTorch conv weight layouts
    w1_t = 0.1 * jax.random.normal(k[0], (CH, CIN, 1, 1), jnp.float32)   # Conv2d(CIN->CH, 1x1)
    wdw_t = 0.1 * jax.random.normal(k[1], (CH, 1, 3, 3), jnp.float32)    # depthwise 3x3
    w3_t = 0.1 * jax.random.normal(k[2], (COUT, CH, 1, 1), jnp.float32)  # Conv2d(CH->COUT, 1x1)
    s1, b1 = bn_fold(k[3], CH)
    s2, b2 = bn_fold(k[4], CH)
    s3, b3 = bn_fold(k[5], COUT)

    # ---- host-side constant folding (static weights only; activations untouched) ----
    w1f = w1_t[:, :, 0, 0] * s1[:, None]              # (CH, CIN)  BN scale folded
    w3f = w3_t[:, :, 0, 0] * s3[:, None]              # (COUT, CH) BN scale folded
    wdwf = wdw_t[:, 0] * s2[:, None, None]            # (CH, 3, 3) BN scale folded

    # per-tap coefficient = depthwise weight x zero-padding validity mask,
    # laid out over the flattened H*W lane axis (tap order ky-major, kx-minor)
    p = jnp.arange(HW)
    py, px = p // W, p % W
    coefs = []
    for ky in (-1, 0, 1):
        for kx in (-1, 0, 1):
            valid = ((py + ky >= 0) & (py + ky < H) &
                     (px + kx >= 0) & (px + kx < W)).astype(jnp.float32)
            coefs.append(wdwf[:, ky + 1, kx + 1][:, None] * valid[None, :])  # (CH, HW)
    coef = jnp.stack(coefs, axis=0)                    # (9, CH, HW)

    kern_params = (w1f, b1[:, None], coef, b2[:, None], w3f, b3[:, None])
    torch_params = (w1_t, wdw_t, w3_t, (s1, b1), (s2, b2), (s3, b3))
    return kern_params, torch_params


# ---------------- pure-JAX reference (for correctness check) ----------------
def ref_forward(x_nchw, torch_params):
    w1_t, wdw_t, w3_t, (s1, b1), (s2, b2), (s3, b3) = torch_params
    x = jnp.transpose(x_nchw, (0, 2, 3, 1))  # NHWC
    dn = ('NHWC', 'HWIO', 'NHWC')

    h1 = lax.conv_general_dilated(x, jnp.transpose(w1_t, (2, 3, 1, 0)),
                                  (1, 1), [(0, 0), (0, 0)], dimension_numbers=dn)
    h1 = jnp.clip(h1 * s1 + b1, 0.0, 6.0)

    h2 = lax.conv_general_dilated(h1, jnp.transpose(wdw_t, (2, 3, 1, 0)),
                                  (1, 1), [(1, 1), (1, 1)],
                                  dimension_numbers=dn, feature_group_count=CH)
    h2 = jnp.clip(h2 * s2 + b2, 0.0, 6.0)

    y = lax.conv_general_dilated(h2, jnp.transpose(w3_t, (2, 3, 1, 0)),
                                 (1, 1), [(0, 0), (0, 0)], dimension_numbers=dn)
    y = y * s3 + b3 + x
    return jnp.transpose(y, (0, 3, 1, 2))


if __name__ == "__main__":
    key = jax.random.PRNGKey(0)
    kx, kp = jax.random.split(key)
    x = jax.random.normal(kx, (N, CIN, H, W), jnp.float32)   # NCHW like PyTorch
    kern_params, torch_params = make_params(kp)

    out = inverted_residual(x, kern_params)
    out = jax.block_until_ready(out)

    ref = jax.block_until_ready(ref_forward(x, torch_params))
    np.testing.assert_allclose(np.asarray(out), np.asarray(ref), rtol=1e-4, atol=1e-4)

    print("KERNEL_OK")
</pallas_src>

<mosaic_0001>
module attributes {stable_mosaic.version = 11 : i64} {
  func.func @inverted_residual_kernel(%arg0: i32, %arg1: memref<1x4x256xf32, #tpu.memory_space<vmem>>, %arg2: memref<16x4xf32, #tpu.memory_space<vmem>>, %arg3: memref<16x1xf32, #tpu.memory_space<vmem>>, %arg4: memref<9x16x256xf32, #tpu.memory_space<vmem>>, %arg5: memref<16x1xf32, #tpu.memory_space<vmem>>, %arg6: memref<4x16xf32, #tpu.memory_space<vmem>>, %arg7: memref<4x1xf32, #tpu.memory_space<vmem>>, %arg8: memref<1x4x256xf32, #tpu.memory_space<vmem>>) attributes {dimension_semantics = [#tpu.dimension_semantics<parallel>], iteration_bounds = array<i64: 2>, scalar_prefetch = 0 : i64, scratch_operands = 0 : i64, tpu.core_type = #tpu.core_type<tc>, window_params = [{transform_indices = @transform_0, window_bounds = array<i64: 1, 4, 256>}, {pipeline_mode = #tpu.pipeline_mode<synchronous>, transform_indices = @transform_1, window_bounds = array<i64: 16, 4>}, {pipeline_mode = #tpu.pipeline_mode<synchronous>, transform_indices = @transform_2, window_bounds = array<i64: 16, 1>}, {pipeline_mode = #tpu.pipeline_mode<synchronous>, transform_indices = @transform_3, window_bounds = array<i64: 9, 16, 256>}, {pipeline_mode = #tpu.pipeline_mode<synchronous>, transform_indices = @transform_4, window_bounds = array<i64: 16, 1>}, {pipeline_mode = #tpu.pipeline_mode<synchronous>, transform_indices = @transform_5, window_bounds = array<i64: 4, 16>}, {pipeline_mode = #tpu.pipeline_mode<synchronous>, transform_indices = @transform_6, window_bounds = array<i64: 4, 1>}, {transform_indices = @transform_7, window_bounds = array<i64: 1, 4, 256>}]} {
    %c0 = arith.constant 0 : index
    %c0_0 = arith.constant 0 : index
    %c0_1 = arith.constant 0 : index
    %0 = vector.load %arg1[%c0, %c0_0, %c0_1] : memref<1x4x256xf32, #tpu.memory_space<vmem>>, vector<1x4x256xf32>
    %1 = vector.shape_cast %0 : vector<1x4x256xf32> to vector<4x256xf32>
    %c0_2 = arith.constant 0 : index
    %c0_3 = arith.constant 0 : index
    %2 = vector.load %arg2[%c0_2, %c0_3] : memref<16x4xf32, #tpu.memory_space<vmem>>, vector<16x4xf32>
    %cst = arith.constant dense<0.000000e+00> : vector<16x256xf32>
    %3 = tpu.matmul %2, %1, %cst {dimension_numbers = #tpu.dot_dimension_numbers<[1], [0], [0], [1], [0, 0, 1, 1], [], []>} : vector<16x4xf32>, vector<4x256xf32>, vector<16x256xf32> -> vector<16x256xf32>
    %c0_4 = arith.constant 0 : index
    %c0_5 = arith.constant 0 : index
    %4 = vector.load %arg3[%c0_4, %c0_5] : memref<16x1xf32, #tpu.memory_space<vmem>>, vector<16x1xf32>
    %5 = vector.broadcast %4 : vector<16x1xf32> to vector<16x256xf32>
    %6 = arith.addf %3, %5 : vector<16x256xf32>
    %cst_6 = arith.constant 0.000000e+00 : f32
    %cst_7 = arith.constant 6.000000e+00 : f32
    %7 = vector.broadcast %cst_6 : f32 to vector<16x256xf32>
    %8 = arith.maximumf %7, %6 : vector<16x256xf32>
    %9 = vector.broadcast %cst_7 : f32 to vector<16x256xf32>
    %10 = arith.minimumf %9, %8 : vector<16x256xf32>
    %c0_8 = arith.constant 0 : index
    %c0_9 = arith.constant 0 : index
    %11 = vector.load %arg5[%c0_8, %c0_9] : memref<16x1xf32, #tpu.memory_space<vmem>>, vector<16x1xf32>
    %c4 = arith.constant 4 : index
    %c0_10 = arith.constant 0 : index
    %c0_11 = arith.constant 0 : index
    %12 = vector.load %arg4[%c4, %c0_10, %c0_11] : memref<9x16x256xf32, #tpu.memory_space<vmem>>, vector<1x16x256xf32>
    %13 = vector.shape_cast %12 : vector<1x16x256xf32> to vector<16x256xf32>
    %14 = arith.mulf %10, %13 : vector<16x256xf32>
    %15 = vector.broadcast %11 : vector<16x1xf32> to vector<16x256xf32>
    %16 = arith.addf %15, %14 : vector<16x256xf32>
    %c17_i32 = arith.constant 17 : i32
    %17 = tpu.dynamic_rotate %10 by %c17_i32 dim 1 : vector<16x256xf32>, i32 -> vector<16x256xf32>
    %c0_12 = arith.constant 0 : index
    %c0_13 = arith.constant 0 : index
    %c0_14 = arith.constant 0 : index
    %18 = vector.load %arg4[%c0_12, %c0_13, %c0_14] : memref<9x16x256xf32, #tpu.memory_space<vmem>>, vector<1x16x256xf32>
    %19 = vector.shape_cast %18 : vector<1x16x256xf32> to vector<16x256xf32>
    %20 = arith.mulf %17, %19 : vector<16x256xf32>
    %21 = arith.addf %16, %20 : vector<16x256xf32>
    %c16_i32 = arith.constant 16 : i32
    %22 = tpu.dynamic_rotate %10 by %c16_i32 dim 1 : vector<16x256xf32>, i32 -> vector<16x256xf32>
    %c1 = arith.constant 1 : index
    %c0_15 = arith.constant 0 : index
    %c0_16 = arith.constant 0 : index
    %23 = vector.load %arg4[%c1, %c0_15, %c0_16] : memref<9x16x256xf32, #tpu.memory_space<vmem>>, vector<1x16x256xf32>
    %24 = vector.shape_cast %23 : vector<1x16x256xf32> to vector<16x256xf32>
    %25 = arith.mulf %22, %24 : vector<16x256xf32>
    %26 = arith.addf %21, %25 : vector<16x256xf32>
    %c15_i32 = arith.constant 15 : i32
    %27 = tpu.dynamic_rotate %10 by %c15_i32 dim 1 : vector<16x256xf32>, i32 -> vector<16x256xf32>
    %c2 = arith.constant 2 : index
    %c0_17 = arith.constant 0 : index
    %c0_18 = arith.constant 0 : index
    %28 = vector.load %arg4[%c2, %c0_17, %c0_18] : memref<9x16x256xf32, #tpu.memory_space<vmem>>, vector<1x16x256xf32>
    %29 = vector.shape_cast %28 : vector<1x16x256xf32> to vector<16x256xf32>
    %30 = arith.mulf %27, %29 : vector<16x256xf32>
    %31 = arith.addf %26, %30 : vector<16x256xf32>
    %c1_i32 = arith.constant 1 : i32
    %32 = tpu.dynamic_rotate %10 by %c1_i32 dim 1 : vector<16x256xf32>, i32 -> vector<16x256xf32>
    %c3 = arith.constant 3 : index
    %c0_19 = arith.constant 0 : index
    %c0_20 = arith.constant 0 : index
    %33 = vector.load %arg4[%c3, %c0_19, %c0_20] : memref<9x16x256xf32, #tpu.memory_space<vmem>>, vector<1x16x256xf32>
    %34 = vector.shape_cast %33 : vector<1x16x256xf32> to vector<16x256xf32>
    %35 = arith.mulf %32, %34 : vector<16x256xf32>
    %36 = arith.addf %31, %35 : vector<16x256xf32>
    %c255_i32 = arith.constant 255 : i32
    %37 = tpu.dynamic_rotate %10 by %c255_i32 dim 1 : vector<16x256xf32>, i32 -> vector<16x256xf32>
    %c5 = arith.constant 5 : index
    %c0_21 = arith.constant 0 : index
    %c0_22 = arith.constant 0 : index
    %38 = vector.load %arg4[%c5, %c0_21, %c0_22] : memref<9x16x256xf32, #tpu.memory_space<vmem>>, vector<1x16x256xf32>
    %39 = vector.shape_cast %38 : vector<1x16x256xf32> to vector<16x256xf32>
    %40 = arith.mulf %37, %39 : vector<16x256xf32>
    %41 = arith.addf %36, %40 : vector<16x256xf32>
    %c241_i32 = arith.constant 241 : i32
    %42 = tpu.dynamic_rotate %10 by %c241_i32 dim 1 : vector<16x256xf32>, i32 -> vector<16x256xf32>
    %c6 = arith.constant 6 : index
    %c0_23 = arith.constant 0 : index
    %c0_24 = arith.constant 0 : index
    %43 = vector.load %arg4[%c6, %c0_23, %c0_24] : memref<9x16x256xf32, #tpu.memory_space<vmem>>, vector<1x16x256xf32>
    %44 = vector.shape_cast %43 : vector<1x16x256xf32> to vector<16x256xf32>
    %45 = arith.mulf %42, %44 : vector<16x256xf32>
    %46 = arith.addf %41, %45 : vector<16x256xf32>
    %c240_i32 = arith.constant 240 : i32
    %47 = tpu.dynamic_rotate %10 by %c240_i32 dim 1 : vector<16x256xf32>, i32 -> vector<16x256xf32>
    %c7 = arith.constant 7 : index
    %c0_25 = arith.constant 0 : index
    %c0_26 = arith.constant 0 : index
    %48 = vector.load %arg4[%c7, %c0_25, %c0_26] : memref<9x16x256xf32, #tpu.memory_space<vmem>>, vector<1x16x256xf32>
    %49 = vector.shape_cast %48 : vector<1x16x256xf32> to vector<16x256xf32>
    %50 = arith.mulf %47, %49 : vector<16x256xf32>
    %51 = arith.addf %46, %50 : vector<16x256xf32>
    %c239_i32 = arith.constant 239 : i32
    %52 = tpu.dynamic_rotate %10 by %c239_i32 dim 1 : vector<16x256xf32>, i32 -> vector<16x256xf32>
    %c8 = arith.constant 8 : index
    %c0_27 = arith.constant 0 : index
    %c0_28 = arith.constant 0 : index
    %53 = vector.load %arg4[%c8, %c0_27, %c0_28] : memref<9x16x256xf32, #tpu.memory_space<vmem>>, vector<1x16x256xf32>
    %54 = vector.shape_cast %53 : vector<1x16x256xf32> to vector<16x256xf32>
    %55 = arith.mulf %52, %54 : vector<16x256xf32>
    %56 = arith.addf %51, %55 : vector<16x256xf32>
    %cst_29 = arith.constant 0.000000e+00 : f32
    %cst_30 = arith.constant 6.000000e+00 : f32
    %57 = vector.broadcast %cst_29 : f32 to vector<16x256xf32>
    %58 = arith.maximumf %57, %56 : vector<16x256xf32>
    %59 = vector.broadcast %cst_30 : f32 to vector<16x256xf32>
    %60 = arith.minimumf %59, %58 : vector<16x256xf32>
    %c0_31 = arith.constant 0 : index
    %c0_32 = arith.constant 0 : index
    %61 = vector.load %arg6[%c0_31, %c0_32] : memref<4x16xf32, #tpu.memory_space<vmem>>, vector<4x16xf32>
    %cst_33 = arith.constant dense<0.000000e+00> : vector<4x256xf32>
    %62 = tpu.matmul %61, %60, %cst_33 {dimension_numbers = #tpu.dot_dimension_numbers<[1], [0], [0], [1], [0, 0, 1, 1], [], []>} : vector<4x16xf32>, vector<16x256xf32>, vector<4x256xf32> -> vector<4x256xf32>
    %c0_34 = arith.constant 0 : index
    %c0_35 = arith.constant 0 : index
    %63 = vector.load %arg7[%c0_34, %c0_35] : memref<4x1xf32, #tpu.memory_space<vmem>>, vector<4x1xf32>
    %64 = vector.broadcast %63 : vector<4x1xf32> to vector<4x256xf32>
    %65 = arith.addf %62, %64 : vector<4x256xf32>
    %66 = arith.addf %65, %1 : vector<4x256xf32>
    %c0_36 = arith.constant 0 : index
    %c0_37 = arith.constant 0 : index
    %c0_38 = arith.constant 0 : index
    %67 = vector.load %arg8[%c0_36, %c0_37, %c0_38] : memref<1x4x256xf32, #tpu.memory_space<vmem>>, vector<1x4x256xf32>
    %68 = vector.shape_cast %67 : vector<1x4x256xf32> to vector<4x256xf32>
    %69 = vector.shape_cast %66 : vector<4x256xf32> to vector<1x4x256xf32>
    tpu.vector_store %arg8[%c0_36, %c0_37, %c0_38], %69 {strides = array<i32>} : memref<1x4x256xf32, #tpu.memory_space<vmem>>, vector<1x4x256xf32>,
    return
  }
  func.func @transform_0(%arg0: i32) -> (i32, i32, i32) {
    %c0_i32 = arith.constant 0 : i32
    %c0_i32_0 = arith.constant 0 : i32
    %c0_i32_1 = arith.constant 0 : i32
    return %arg0, %c0_i32, %c0_i32_0 : i32, i32, i32
  }
  func.func @transform_1(%arg0: i32) -> (i32, i32) {
    %c0_i32 = arith.constant 0 : i32
    %c0_i32_0 = arith.constant 0 : i32
    %c0_i32_1 = arith.constant 0 : i32
    return %c0_i32, %c0_i32_0 : i32, i32
  }
  func.func @transform_2(%arg0: i32) -> (i32, i32) {
    %c0_i32 = arith.constant 0 : i32
    %c0_i32_0 = arith.constant 0 : i32
    %c0_i32_1 = arith.constant 0 : i32
    return %c0_i32, %c0_i32_0 : i32, i32
  }
  func.func @transform_3(%arg0: i32) -> (i32, i32, i32) {
    %c0_i32 = arith.constant 0 : i32
    %c0_i32_0 = arith.constant 0 : i32
    %c0_i32_1 = arith.constant 0 : i32
    %c0_i32_2 = arith.constant 0 : i32
    return %c0_i32, %c0_i32_0, %c0_i32_1 : i32, i32, i32
  }
  func.func @transform_4(%arg0: i32) -> (i32, i32) {
    %c0_i32 = arith.constant 0 : i32
    %c0_i32_0 = arith.constant 0 : i32
    %c0_i32_1 = arith.constant 0 : i32
    return %c0_i32, %c0_i32_0 : i32, i32
  }
  func.func @transform_5(%arg0: i32) -> (i32, i32) {
    %c0_i32 = arith.constant 0 : i32
    %c0_i32_0 = arith.constant 0 : i32
    %c0_i32_1 = arith.constant 0 : i32
    return %c0_i32, %c0_i32_0 : i32, i32
  }
  func.func @transform_6(%arg0: i32) -> (i32, i32) {
    %c0_i32 = arith.constant 0 : i32
    %c0_i32_0 = arith.constant 0 : i32
    %c0_i32_1 = arith.constant 0 : i32
    return %c0_i32, %c0_i32_0 : i32, i32
  }
  func.func @transform_7(%arg0: i32) -> (i32, i32, i32) {
    %c0_i32 = arith.constant 0 : i32
    %c0_i32_0 = arith.constant 0 : i32
    %c0_i32_1 = arith.constant 0 : i32
    return %arg0, %c0_i32, %c0_i32_0 : i32, i32, i32
  }
}

</mosaic_0001>

<bundles_post_ra>
// kernel: tpu_custom_call.1
= control target key start
LH: loop header
LB: loop body
LE: loop exit
PB: predicated region body
PF: predicated region fallthrough
CT: control target
= control target key end

     0   :  { %12 = vsyncpa [#allocation3], 0  ;;  %s1280_s0 = inlined_call_operand.vmem [shape: f32[2,4,256], index: 0, kind: input, shape index: {}]   ;;  %s1281_s1 = inlined_call_operand.vmem [shape: f32[16,4], index: 1, kind: input, shape index: {}]   ;;  %s1282_s2 = inlined_call_operand.vmem [shape: f32[16,1], index: 2, kind: input, shape index: {}]   ;;  %s1283_s3 = inlined_call_operand.hbm [shape: f32[9,16,256], index: 3, kind: input, shape index: {}]   ;;  %s1284_s4 = inlined_call_operand.vmem [shape: f32[16,1], index: 4, kind: input, shape index: {}]   ;;  %s1285_s5 = inlined_call_operand.vmem [shape: f32[4,16], index: 5, kind: input, shape index: {}]   ;;  %s1286_s6 = inlined_call_operand.vmem [shape: f32[4,1], index: 6, kind: input, shape index: {}]   ;;  %s1287_s7 = inlined_call_operand.hbm [shape: f32[2,4,256], index: 7, kind: output, shape index: {}]  }
   0x1   :  { %13 = vsyncpa [#allocation4], 0 }
   0x2   :  { %15 = vsyncpa [#allocation4 + $0x1], 0  ;;  %s1010_s24 = smov 0   ;;  %s1012_s25 = smov 0  }
   0x3   :  { %s1014_s26 = smov 0   ;;  %s1016_s27 = smov 0  }
   0x4 LB: > { %s1031_s28 = sadd.s32 4294967295, %s956_s27   ;;  %s773_s29 = sadd.s32 4294967294, %s956_s27   ;;  %s956_s27 = sphi %s1016_s27, %s1293_s27   ;;  %s952_s26 = sphi %s1014_s26, %s1292_s26   ;;  %s948_s25 = sphi %s1012_s25, %s1291_s25   ;;  %s944_s24 = sphi %s1010_s24, %s1290_s24  }
   0x5   : > { %s1035_s30 = sadd.s32 1, %s956_s27   ;;  %s180_s8 = sadd.s32 1, %s952_s26 }
   0x6   : > { %s177_s9 = ssub.s32 %s956_s27, %s1035_s30  ;;  %p190_p0 = scmp.ne.s32.totalorder %s952_s26, %s948_s25 }
   0x7   : > { %p178_p1 = scmp.eq.s32.totalorder %s177_s9, 0  ;;  %p191_p2 = scmp.eq.s32.totalorder %s1031_s28, 1 }
   0x8   : > { %p196_p3 = scmp.ne.s32.totalorder %s948_s25, %s944_s24  ;;  %p197_p4 = scmp.eq.s32.totalorder %s773_s29, 1 }
   0x9   : > { %s1046_s10 = scalar_select %p178_p1, %s952_s26, %s180_s8  }
   0xa   : > { %p1048_p5 = por %p191_p2, %p190_p0  ;;  %p1052_p6 = por %p197_p4, %p196_p3 }
   0xb   : > { %p774_p7 = scmp.ge.s32.totalorder %s956_s27, 1  ;;  %p204_p8 = scmp.lt.s32.totalorder %s956_s27, 3 }
   0xc   : > { %p811_p9 = scmp.eq.s32.totalorder %s1031_s28, 0  ;;  %s221_s15 = sshll.u32 %s1283_s3, 4  ;;  %s222_s15 = int_to_ptr.hbm [resolvable:$true] %s221_s15 }
   0xd   : > { %p205_p10 = pnand %p774_p7, %p204_p8  ;;  %s958_s16 = smov [#allocation2]  }
   0xe   : > { %s223_s17 = sshll.u32 %s958_s16, 4  ;;  %s959_s18 = smov 256   ;;  %s224_s17 = int_to_ptr.vmem [resolvable:$true] %s223_s17 }
   0xf   : > { %p803_p11 = pneg %p205_p10  ;;  %s960_s19 = smov 16  }
  0x10   : > { %256 = sbr.rel (%p205_p10) target bundleno = 525 (0x20d), region = 48 }
  0x11   : > { %p804_p12 = pnand %p811_p9, %p803_p11 }
  0x13   : > { %806 = dma.hbm_to_vmem [thread:$0]  (!%p804_p12), %s222_s15, 4608, %s224_s17, [#allocation3], %s959_s18, %s959_s18, %s960_s19  }
  0x15   : > { %935 = dma.done.wait (%p811_p9), [#allocation3], 4608  }
  0x16   : > { %937 = vsyncadd (%p811_p9), [#allocation3], 4294962688  ;;  %p289_p13 = scmp.lt.s32.totalorder %s1031_s28, 1  ;;  %v961_v0 = vmov 0   ;;  %v298_v1 = vld [vmem:[%s1282_s2 + $0x8] sm:$0xff]  ;;  %v297_v4 = vld [vmem:[%s1282_s2] sm:$0xff]  ;;  %v412_v34 = vlaneseq }
  0x17   : > { %858 = vset.pattern.permute.xlu0 %v961_v0  ;;  %859 = vset.pattern.permute.xlu2 %v961_v0  ;;  %v380_v3 = vld [vmem:[%s1284_s4 + $0x8] sm:$0xff]  ;;  %vm320_vm0 = vcmask 1043456   ;;  %v295_v5 = vld [vmem:[%s1281_s1] sm:$0xff]  ;;  %vm313_vm1 = vcmask 31744   ;;  %s962_s23 = smov 16   ;;  %s964_s8 = smov 1  }
  0x18   : > { %s290_s20 = scalar_select %p289_p13, %s1031_s28, 1  ;;  %306 = vperm.xlu0 %858, %v298_v1   ;;  %397 = vperm.xlu2 %859, %v380_v3   ;;  %v379_v8 = vld [vmem:[%s1284_s4] sm:$0xff]  ;;  %v296_v9 = vld [vmem:[%s1281_s1 + $0x8] sm:$0xff]  ;;  %v1143_v36 = vand.u32 127, %v412_v34  ;;  %v383_v38 = vld [vmem:[#allocation2 + $0x88] sm:$0xff]  ;;  %vm628_vm10 = vcmask 130048  }
  0x19   : > { %v385_v23 = vld [vmem:[#allocation2 + $0x98] sm:$0xff]  ;;  %s965_s9 = smov 15   ;;  %s966_s13 = smov 127   ;;  %v382_v37 = vld [vmem:[#allocation2 + $0x80] sm:$0xff]  ;;  %v420_v43 = vld [vmem:[#allocation2 + $0x8] sm:$0xff] }
  0x1a   : > { %s795_s21 = sshll.u32 %s290_s20, 3  ;;  %s967_s14 = smov 112   ;;  %v622_v32 = vld [vmem:[%s1286_s6] sm:$0xf]  ;;  %vm414_vm2 = vcmp.lt.s32.totalorder %v1143_v36, 17  ;;  %vm439_vm3 = vcmp.lt.s32.totalorder %v1143_v36, 16 }
  0x1b   : > { %s293_s29 = scalar_lea.vmem %s1280_s0, %s795_s21  ;;  %s968_s15 = smov 113   ;;  %v419_v42 = vld [vmem:[#allocation2] sm:$0xff]  ;;  %v446_v49 = vld [vmem:[#allocation2 + $0x28] sm:$0xff]  ;;  %vm465_vm4 = vcmp.lt.s32.totalorder %v1143_v36, 15  ;;  %vm491_vm5 = vcmp.lt.s32.totalorder %v1143_v36, 1  ;;  %vm517_vm6 = vcmp.lt.s32.totalorder %v1143_v36, 127 }
  0x1c   : > { %v294_v2 = vld [vmem:[%s293_s29] sm:$0xff]  ;;  %s963_s29 = smov 17   ;;  %s969_s16 = smov 111   ;;  %v445_v48 = vld [vmem:[#allocation2 + $0x20] sm:$0xff]  ;;  %vm543_vm7 = vcmp.lt.s32.totalorder %v1143_v36, 113  ;;  %vm569_vm8 = vcmp.lt.s32.totalorder %v1143_v36, 112 }
  0x1d   : > { %310 = vst [vmem:[#allocation1] ss:$2 sm:$0xff] %v294_v2  ;;  %v471_v1 = vld [vmem:[#allocation2 + $0x40] sm:$0xff]  ;;  %vm595_vm9 = vcmp.lt.s32.totalorder %v1143_v36, 111  ;;  %v621_v36 = vld [vmem:[%s1285_s5] sm:$0xf] }
  0x1e   : > { %s286_s21 = sand.u32 1, %s948_s25   ;;  %s910_s20 = scalar_lea.hbm %s1287_s7, 16 }
  0x1f   : > { %s779_s22 = sshll.u32 %s286_s21, 3 }
  0x20   : > { %301 = vperm.xlu0 %858, %v297_v4  }
  0x24   : > { %v311_v6 = vld.sshfl [vmem:[#allocation1] sm:$0xff pattern:$0x75316420]  ;;  %v312_v7 = vld.sshfl [vmem:[#allocation1 + $0x8] sm:$0xff pattern:$0x75316420] }
  0x25   : > { %782 = vmatpush.msk.msra.mxu0 %vm320_vm0, %v311_v6  ;;  %672 = vst [vmem:[#allocation1] ss:$2 sm:$0xff] %v294_v2  ;;  %785 = vmatpush.msk.msra.mxu1 %vm320_vm0, %v312_v7  ;;  %v472_v2 = vld [vmem:[#allocation2 + $0x48] sm:$0xff]  ;;  %v497_v7 = vld [vmem:[#allocation2 + $0x60] sm:$0xff] }
  0x26   : > { %783 = vmatmul.msk.f32.vlgmr.msra.gmra.mxu0 %vm313_vm1, %v295_v5  ;;  %786 = vmatmul.msk.f32.vlgmr.msra.gmra.mxu1 %vm313_vm1, %v295_v5 }
  0x28   : > { %392 = vperm.xlu0 %858, %v379_v8   ;;  %v498_v8 = vld [vmem:[#allocation2 + $0x68] sm:$0xff] }
  0x2e   : > { %784 = vmatmul.msk.f32.gmra.mxu0 %vm313_vm1, %v296_v9  ;;  %787 = vmatmul.msk.f32.gmra.mxu1 %vm313_vm1, %v296_v9 }
  0x72   : > { %v1107_v25 = vpop.permute.xlu2 %397 }
  0x8a   : > { %v307_v10 = vpop.permute.xlu0 %306 }
  0x92   : > { %v302_v11 = vpop.permute.xlu0 %301 }
  0x9a   : > { %v393_v35 = vpop.permute.xlu0 %392 }
  0xa3   : > { %v342_v12 = vpop.f32.mrf.mxu0  ;;  %v365_v14 = vpop.f32.mrf.mxu1 }
  0xa4   : > { %v343_v13 = vadd.f32 %v342_v12, %v302_v11  ;;  %v366_v15 = vadd.f32 %v365_v14, %v302_v11  ;;  %v523_v14 = vld [vmem:[#allocation2 + $0xa0] sm:$0xff] }
  0xa6   : > { %v371_v16 = vmax.f32 %v343_v13, 0.0  ;;  %v372_v17 = vmax.f32 %v366_v15, 0.0  ;;  %v524_v15 = vld [vmem:[#allocation2 + $0xa8] sm:$0xff] }
  0xa8   : > { %v1093_v18 = vmin.f32 %v371_v16, 6.0  ;;  %v1095_v19 = vmin.f32 %v372_v17, 6.0 }
  0xaa   : > { %431 = vrot.lane.b32.xlu1 %v1093_v18, %s962_s23  ;;  %404 = vrot.lane.b32.xlu2 %v1093_v18, %s963_s29  ;;  %v386_v40 = vmul.f32 %v382_v37, %v1093_v18  ;;  %v387_v41 = vmul.f32 %v383_v38, %v1095_v19 }
  0xab   : > { %408 = vrot.lane.b32.xlu0 %v1095_v19, %s963_s29  ;;  %v368_v20 = vpop.f32.mrf.mxu1  ;;  %v345_v28 = vpop.f32.mrf.mxu0 }
  0xac   : > { %v369_v21 = vadd.f32 %v368_v20, %v307_v10  ;;  %v346_v29 = vadd.f32 %v345_v28, %v307_v10  ;;  %v400_v52 = vadd.f32 %v393_v35, %v386_v40  ;;  %v401_v53 = vadd.f32 %v393_v35, %v387_v41 }
  0xae   : > { %v374_v22 = vmax.f32 %v369_v21, 0.0  ;;  %v373_v30 = vmax.f32 %v346_v29, 0.0 }
  0xb0   : > { %v378_v24 = vmin.f32 %v374_v22, 6.0  ;;  %v1120_v31 = vmin.f32 %v373_v30, 6.0 }
  0xb2   : > { %487 = vrot.lane.b32.xlu1 %v1095_v19, %s964_s8  ;;  %435 = vrot.lane.b32.xlu2 %v1095_v19, %s962_s23  ;;  %v389_v26 = vmul.f32 %v385_v23, %v378_v24 }
  0xb3   : > { %461 = vrot.lane.b32.xlu0 %v1095_v19, %s965_s9 }
  0xb4   : > { %v1111_v27 = vadd.f32 %v1107_v25, %v389_v26 }
  0xba   : > { %509 = vrot.lane.b32.xlu1 %v1093_v18, %s966_s13  ;;  %457 = vrot.lane.b32.xlu2 %v1093_v18, %s965_s9 }
  0xbb   : > { %483 = vrot.lane.b32.xlu0 %v1093_v18, %s964_s8 }
  0xc2   : > { %565 = vrot.lane.b32.xlu1 %v1095_v19, %s967_s14  ;;  %513 = vrot.lane.b32.xlu2 %v1095_v19, %s966_s13 }
  0xc3   : > { %539 = vrot.lane.b32.xlu0 %v1095_v19, %s968_s15 }
  0xca   : > { %406 = vrot.lane.b32.xlu1 %v1120_v31, %s963_s29  ;;  %535 = vrot.lane.b32.xlu2 %v1093_v18, %s968_s15 }
  0xcb   : > { %561 = vrot.lane.b32.xlu0 %v1093_v18, %s967_s14 }
  0xd2   : > { %410 = vrot.lane.b32.xlu1 %v378_v24, %s963_s29  ;;  %437 = vrot.lane.b32.xlu2 %v378_v24, %s962_s23 }
  0xd3   : > { %459 = vrot.lane.b32.xlu0 %v1120_v31, %s965_s9 }
  0xda   : > { %433 = vrot.lane.b32.xlu1 %v1120_v31, %s962_s23  ;;  %489 = vrot.lane.b32.xlu2 %v378_v24, %s964_s8  ;;  %s796_s23 = sshll.u32 %s1031_s28, 3  ;;  %s686_s28 = scalar_lea.sflag [#allocation4], %s286_s21 }
  0xdb   : > { %515 = vrot.lane.b32.xlu0 %v378_v24, %s966_s13 }
  0xe2   : > { %463 = vrot.lane.b32.xlu1 %v378_v24, %s965_s9  ;;  %511 = vrot.lane.b32.xlu2 %v1120_v31, %s966_s13  ;;  %s697_s9 = scalar_lea.hbm %s1287_s7, %s796_s23  ;;  %s288_s13 = scalar_lea.vmem [#allocation5], %s779_s22 }
  0xe3   : > { %537 = vrot.lane.b32.xlu0 %v1120_v31, %s968_s15 }
  0xea   : > { %485 = vrot.lane.b32.xlu1 %v1120_v31, %s964_s8  ;;  %567 = vrot.lane.b32.xlu2 %v378_v24, %s967_s14 }
  0xeb   : > { %593 = vrot.lane.b32.xlu0 %v378_v24, %s969_s16 }
  0xf2   : > { %541 = vrot.lane.b32.xlu1 %v378_v24, %s968_s15  ;;  %589 = vrot.lane.b32.xlu2 %v1120_v31, %s969_s16  ;;  %s701_s15 = sshll.u32 %s697_s9, 4  ;;  %s702_s15 = int_to_ptr.hbm [resolvable:$true] %s701_s15 }
  0xf3   : > { %625 = vperm.xlu0 %858, %v622_v32  }
  0xfa   : > { %563 = vrot.lane.b32.xlu1 %v1120_v31, %s967_s14  ;;  %591 = vrot.lane.b32.xlu2 %v1095_v19, %s969_s16  ;;  %s699_s14 = sshll.u32 %s288_s13, 4  ;;  %s700_s14 = int_to_ptr.vmem [resolvable:$true] %s699_s14 }
 0x102   : > { %587 = vrot.lane.b32.xlu1 %v1093_v18, %s969_s16  ;;  %s904_s16 = sshra.s32 %s702_s15, 4  ;;  %s905_s16 = int_to_ptr.hbm [resolvable:$true] %s904_s16 }
 0x103   : > { %s906_s17 = scalar_lea.hbm %s905_s16, 8  ;;  %p911_p3 = scmp.lt.s32.totalorder %s905_s16, %s1287_s7 }
 0x104   : > { %v405_v33 = vpop.permute.xlu2 %404  ;;  %p907_p0 = scmp.ne.s32.totalorder %s905_s16, %s906_s17  ;;  %p912_p4 = scmp.lt.s32.totalorder %s910_s20, %s906_s17 }
 0x106   : > { %p908_p1 = pnand %p907_p0, %p1048_p5  ;;  %p913_p7 = por %p912_p4, %p911_p3 }
 0x108   : > { %p909_p2 = pneg %p908_p1 }
 0x10a   : > { %p914_p8 = pnand %p913_p7, %p909_p2 }
 0x10c   : > { %v436_v39 = vpop.permute.xlu2 %435 }
 0x114   : > { %v458_v60 = vpop.permute.xlu2 %457 }
 0x11c   : > { %v432_v44 = vpop.permute.xlu1 %431  ;;  %v514_v10 = vpop.permute.xlu2 %513 }
 0x11d   : > { %v409_v45 = vpop.permute.xlu0 %408  ;;  %v440_v50 = vsel %vm439_vm3, %v432_v44, %v436_v39  ;;  %v442_v51 = vsel %vm439_vm3, %v436_v39, %v432_v44 }
 0x11e   : > { %v415_v46 = vsel %vm414_vm2, %v405_v33, %v409_v45  ;;  %v417_v47 = vsel %vm414_vm2, %v409_v45, %v405_v33  ;;  %v449_v58 = vmul.f32 %v445_v48, %v442_v51  ;;  %v450_v59 = vmul.f32 %v446_v49, %v440_v50  ;;  %v384_v45 = vld [vmem:[#allocation2 + $0x90] sm:$0xff] }
 0x11f   : > { %v423_v54 = vmul.f32 %v419_v42, %v417_v47  ;;  %v424_v55 = vmul.f32 %v420_v43, %v415_v46  ;;  %v421_v46 = vld [vmem:[#allocation2 + $0x10] sm:$0xff]  ;;  %v422_v47 = vld [vmem:[#allocation2 + $0x18] sm:$0xff]  ;;  %v388_v50 = vmul.f32 %v384_v45, %v1120_v31  ;;  %v549_v45 = vld [vmem:[#allocation2 + $0xc0] sm:$0xff] }
 0x121   : > { %v427_v56 = vadd.f32 %v423_v54, %v400_v52  ;;  %v428_v57 = vadd.f32 %v424_v55, %v401_v53  ;;  %v447_v52 = vld [vmem:[#allocation2 + $0x30] sm:$0xff]  ;;  %v448_v53 = vld [vmem:[#allocation2 + $0x38] sm:$0xff]  ;;  %v402_v31 = vadd.f32 %v1107_v25, %v388_v50 }
 0x123   : > { %v453_v61 = vadd.f32 %v449_v58, %v427_v56  ;;  %v454_v62 = vadd.f32 %v450_v59, %v428_v57  ;;  %v473_v58 = vld [vmem:[#allocation2 + $0x50] sm:$0xff]  ;;  %v474_v59 = vld [vmem:[#allocation2 + $0x58] sm:$0xff] }
 0x124   : > { %v488_v63 = vpop.permute.xlu1 %487  ;;  %v1178_v32 = vpop.permute.xlu2 %535 }
 0x125   : > { %v462_v0 = vpop.permute.xlu0 %461 }
 0x126   : > { %v466_v3 = vsel %vm465_vm4, %v458_v60, %v462_v0  ;;  %v468_v4 = vsel %vm465_vm4, %v462_v0, %v458_v60 }
 0x127   : > { %v475_v5 = vmul.f32 %v471_v1, %v468_v4  ;;  %v476_v6 = vmul.f32 %v472_v2, %v466_v3  ;;  %v499_v2 = vld [vmem:[#allocation2 + $0x70] sm:$0xff]  ;;  %v500_v3 = vld [vmem:[#allocation2 + $0x78] sm:$0xff] }
 0x129   : > { %v479_v18 = vadd.f32 %v475_v5, %v453_v61  ;;  %v480_v19 = vadd.f32 %v476_v6, %v454_v62 }
 0x12c   : > { %v510_v9 = vpop.permute.xlu1 %509  ;;  %v438_v35 = vpop.permute.xlu2 %437 }
 0x12d   : > { %v484_v11 = vpop.permute.xlu0 %483  ;;  %v518_v16 = vsel %vm517_vm6, %v510_v9, %v514_v10  ;;  %v520_v17 = vsel %vm517_vm6, %v514_v10, %v510_v9 }
 0x12e   : > { %v492_v12 = vsel %vm491_vm5, %v484_v11, %v488_v63  ;;  %v494_v13 = vsel %vm491_vm5, %v488_v63, %v484_v11  ;;  %v527_v24 = vmul.f32 %v523_v14, %v518_v16  ;;  %v528_v26 = vmul.f32 %v524_v15, %v520_v17  ;;  %v525_v14 = vld [vmem:[#allocation2 + $0xb0] sm:$0xff]  ;;  %v526_v17 = vld [vmem:[#allocation2 + $0xb8] sm:$0xff] }
 0x12f   : > { %v501_v20 = vmul.f32 %v497_v7, %v494_v13  ;;  %v502_v21 = vmul.f32 %v498_v8, %v492_v12 }
 0x131   : > { %v505_v22 = vadd.f32 %v501_v20, %v479_v18  ;;  %v506_v23 = vadd.f32 %v502_v21, %v480_v19  ;;  %v552_v20 = vld [vmem:[#allocation2 + $0xd8] sm:$0xff] }
 0x133   : > { %v1172_v28 = vadd.f32 %v527_v24, %v505_v22  ;;  %v1174_v29 = vadd.f32 %v528_v26, %v506_v23 }
 0x134   : > { %v1176_v30 = vpop.permute.xlu1 %565  ;;  %v490_v39 = vpop.permute.xlu2 %489 }
 0x135   : > { %v1180_v33 = vpop.permute.xlu0 %539 }
 0x13c   : > { %v407_v34 = vpop.permute.xlu1 %406  ;;  %v512_v43 = vpop.permute.xlu2 %511 }
 0x13d   : > { %v1182_v37 = vpop.permute.xlu0 %561 }
 0x144   : > { %v411_v38 = vpop.permute.xlu1 %410  ;;  %v568_v62 = vpop.permute.xlu2 %567 }
 0x145   : > { %v460_v40 = vpop.permute.xlu0 %459  ;;  %v416_v48 = vsel %vm414_vm2, %v407_v34, %v411_v38  ;;  %v418_v49 = vsel %vm414_vm2, %v411_v38, %v407_v34 }
 0x146   : > { %v425_v56 = vmul.f32 %v421_v46, %v418_v49  ;;  %v426_v57 = vmul.f32 %v422_v47, %v416_v48  ;;  %v550_v46 = vld [vmem:[#allocation2 + $0xc8] sm:$0xff]  ;;  %v570_v47 = vsel %vm569_vm8, %v1182_v37, %v1176_v30  ;;  %v572_v48 = vsel %vm569_vm8, %v1176_v30, %v1182_v37 }
 0x148   : > { %v429_v6 = vadd.f32 %v425_v56, %v402_v31  ;;  %v430_v7 = vadd.f32 %v426_v57, %v1111_v27  ;;  %v551_v27 = vld [vmem:[#allocation2 + $0xd0] sm:$0xff]  ;;  %v575_v56 = vld [vmem:[#allocation2 + $0xe0] sm:$0xff]  ;;  %v576_v57 = vld [vmem:[#allocation2 + $0xe8] sm:$0xff] }
 0x14c   : > { %v434_v41 = vpop.permute.xlu1 %433 }
 0x14d   : > { %v516_v44 = vpop.permute.xlu0 %515  ;;  %v441_v54 = vsel %vm439_vm3, %v434_v41, %v438_v35  ;;  %v443_v55 = vsel %vm439_vm3, %v438_v35, %v434_v41  ;;  %v590_v35 = vpop.permute.xlu2 %589  ;;  %v544_v41 = vsel %vm543_vm7, %v1178_v32, %v1180_v33 }
 0x14e   : > { %v451_v63 = vmul.f32 %v447_v52, %v443_v55  ;;  %v452_v0 = vmul.f32 %v448_v53, %v441_v54  ;;  %v519_v18 = vsel %vm517_vm6, %v512_v43, %v516_v44  ;;  %v521_v19 = vsel %vm517_vm6, %v516_v44, %v512_v43  ;;  %v577_v43 = vld [vmem:[#allocation2 + $0xf0] sm:$0xff]  ;;  %v578_v44 = vld [vmem:[#allocation2 + $0xf8] sm:$0xff] }
 0x14f   : > { %v529_v26 = vmul.f32 %v525_v14, %v519_v18  ;;  %v530_v34 = vmul.f32 %v526_v17, %v521_v19  ;;  %v603_v52 = vld [vmem:[#allocation2 + $0x110] sm:$0xff]  ;;  %v604_v53 = vld [vmem:[#allocation2 + $0x118] sm:$0xff] }
 0x150   : > { %v455_v10 = vadd.f32 %v451_v63, %v429_v6  ;;  %v456_v11 = vadd.f32 %v452_v0, %v430_v7  ;;  %v601_v7 = vld [vmem:[#allocation2 + $0x100] sm:$0xff] }
 0x154   : > { %v464_v42 = vpop.permute.xlu1 %463 }
 0x155   : > { %v467_v60 = vsel %vm465_vm4, %v460_v40, %v464_v42  ;;  %v469_v61 = vsel %vm465_vm4, %v464_v42, %v460_v40  ;;  %v538_v1 = vpop.permute.xlu0 %537  ;;  %v546_v42 = vsel %vm543_vm7, %v1180_v33, %v1178_v32 }
 0x156   : > { %v477_v8 = vmul.f32 %v473_v58, %v469_v61  ;;  %v478_v9 = vmul.f32 %v474_v59, %v467_v60  ;;  %v553_v60 = vmul.f32 %v549_v45, %v544_v41  ;;  %v554_v61 = vmul.f32 %v550_v46, %v546_v42 }
 0x158   : > { %v481_v15 = vadd.f32 %v477_v8, %v455_v10  ;;  %v482_v16 = vadd.f32 %v478_v9, %v456_v11  ;;  %v557_v6 = vadd.f32 %v553_v60, %v1172_v28  ;;  %v602_v8 = vld [vmem:[#allocation2 + $0x108] sm:$0xff]  ;;  %v592_v9 = vpop.permute.xlu2 %591 }
 0x15c   : > { %v486_v51 = vpop.permute.xlu1 %485 }
 0x15d   : > { %v493_v4 = vsel %vm491_vm5, %v486_v51, %v490_v39  ;;  %v495_v5 = vsel %vm491_vm5, %v490_v39, %v486_v51  ;;  %v594_v38 = vpop.permute.xlu0 %593 }
 0x15e   : > { %v503_v25 = vmul.f32 %v499_v2, %v495_v5  ;;  %v504_v12 = vmul.f32 %v500_v3, %v493_v4  ;;  %v597_v32 = vsel %vm595_vm9, %v590_v35, %v594_v38  ;;  %v599_v33 = vsel %vm595_vm9, %v594_v38, %v590_v35 }
 0x15f   : > { %v607_v31 = vmul.f32 %v603_v52, %v597_v32  ;;  %v608_v63 = vmul.f32 %v604_v53, %v599_v33  ;;  %v579_v2 = vmul.f32 %v575_v56, %v570_v47  ;;  %v580_v3 = vmul.f32 %v576_v57, %v572_v48 }
 0x160   : > { %v507_v23 = vadd.f32 %v503_v25, %v481_v15  ;;  %v508_v24 = vadd.f32 %v504_v12, %v482_v16 }
 0x161   : > { %v583_v14 = vadd.f32 %v579_v2, %v557_v6 }
 0x162   : > { %v533_v49 = vadd.f32 %v529_v26, %v507_v23  ;;  %v534_v50 = vadd.f32 %v530_v34, %v508_v24  ;;  %v674_v34 = vld.sshfl [vmem:[#allocation1 + $0x8] sm:$0xff pattern:$0x75316420] }
 0x164   : > { %v542_v13 = vpop.permute.xlu1 %541 }
 0x165   : > { %v545_v21 = vsel %vm543_vm7, %v538_v1, %v542_v13  ;;  %v547_v22 = vsel %vm543_vm7, %v542_v13, %v538_v1  ;;  %v626_v23 = vpop.permute.xlu0 %625 }
 0x166   : > { %v555_v39 = vmul.f32 %v551_v27, %v545_v21  ;;  %v556_v40 = vmul.f32 %v552_v20, %v547_v22 }
 0x168   : > { %v559_v30 = vadd.f32 %v555_v39, %v533_v49  ;;  %v560_v37 = vadd.f32 %v556_v40, %v534_v50  ;;  %v673_v39 = vld.sshfl [vmem:[#allocation1] sm:$0xff pattern:$0x75316420] }
 0x16c   : > { %v564_v51 = vpop.permute.xlu1 %563 }
 0x16d   : > { %v571_v54 = vsel %vm569_vm8, %v564_v51, %v568_v62  ;;  %v573_v55 = vsel %vm569_vm8, %v568_v62, %v564_v51  ;;  %v558_v62 = vadd.f32 %v554_v61, %v1174_v29 }
 0x16e   : > { %v581_v58 = vmul.f32 %v577_v43, %v571_v54  ;;  %v582_v59 = vmul.f32 %v578_v44, %v573_v55 }
 0x16f   : > { %v584_v15 = vadd.f32 %v580_v3, %v558_v62 }
 0x170   : > { %v585_v0 = vadd.f32 %v581_v58, %v559_v30  ;;  %v586_v1 = vadd.f32 %v582_v59, %v560_v37 }
 0x172   : > { %v611_v4 = vadd.f32 %v607_v31, %v585_v0  ;;  %v612_v5 = vadd.f32 %v608_v63, %v586_v1 }
 0x174   : > { %v588_v10 = vpop.permute.xlu1 %587  ;;  %v615_v11 = vmax.f32 %v611_v4, 0.0  ;;  %v616_v25 = vmax.f32 %v612_v5, 0.0 }
 0x175   : > { %v596_v12 = vsel %vm595_vm9, %v588_v10, %v592_v9  ;;  %v598_v13 = vsel %vm595_vm9, %v592_v9, %v588_v10 }
 0x176   : > { %v605_v16 = vmul.f32 %v601_v7, %v596_v12  ;;  %v606_v17 = vmul.f32 %v602_v8, %v598_v13  ;;  %v619_v18 = vmin.f32 %v615_v11, 6.0  ;;  %v620_v28 = vmin.f32 %v616_v25, 6.0 }
 0x178   : > { %646 = vmatpush.msra.mxu2 %v619_v18  ;;  %666 = vmatpush.msra.mxu3 %v620_v28  ;;  %v609_v29 = vadd.f32 %v605_v16, %v583_v14  ;;  %v610_v19 = vadd.f32 %v606_v17, %v584_v15 }
 0x17a   : > { %v613_v27 = vmax.f32 %v609_v29, 0.0  ;;  %v614_v20 = vmax.f32 %v610_v19, 0.0 }
 0x17c   : > { %v617_v21 = vmin.f32 %v613_v27, 6.0  ;;  %v618_v22 = vmin.f32 %v614_v20, 6.0 }
 0x17e   : > { %647 = vmatpush.msra.mxu2 %v617_v21  ;;  %667 = vmatpush.msra.mxu3 %v618_v22 }
 0x17f   : > { %788 = vmatmul.msk.f32.vlgmr.msra.gmra.mxu2 %vm628_vm10, %v621_v36  ;;  %789 = vmatmul.msk.f32.vlgmr.msra.gmra.mxu3 %vm628_vm10, %v621_v36 }
 0x202   : > { %v649_v24 = vpop.f32.mrf.mxu2  ;;  %v669_v26 = vpop.f32.mrf.mxu3 }
 0x203   : > { %v650_v35 = vadd.f32 %v649_v24, %v626_v23  ;;  %v670_v38 = vadd.f32 %v669_v26, %v626_v23 }
 0x205   : > { %v678_v40 = vadd.f32 %v674_v34, %v670_v38  ;;  %v677_v41 = vadd.f32 %v673_v39, %v650_v35 }
 0x207   : > { %v681_v42 = vrot.slane %v678_v40, 4 }
 0x209   : > { %v682_v43 = vsel %vm320_vm0, %v677_v41, %v681_v42 }
 0x20a   : > { %684 = vst [vmem:[%s288_s13] sm:$0xff] %v682_v43 }
 0x20b   : > { %917 = shalt.err (!%p914_p8)
}
 0x20c   : > { %801 = dma.vmem_to_hbm [thread:$0]  (%p1048_p5), %s700_s14, 128, %s702_s15, %s686_s28  }
 0x20d PF: > { %p813_p9 = scmp.ge.s32.totalorder %s956_s27, 2  ;;  %s713_s21 = sand.u32 1, %s944_s24  }
 0x20e   : > { %s714_s29 = scalar_lea.sflag [#allocation4], %s713_s21 }
 0x20f   : > { %p808_p10 = pnand %p813_p9, %p1052_p6 }
 0x211   : > { %p809_p11 = pneg %p808_p10 }
 0x213   : > { %939 = dma.done.wait (%p809_p11), %s714_s29, 128  }
 0x214   : > { %941 = vsyncadd (%p809_p11), %s714_s29, 4294967168  ;;  %p18_p12 = scmp.ge.s32.totalorder %s1035_s30, 4   ;;  %s1290_s24 = smov %s948_s25 }
 0x215   : > { %s1291_s25 = smov %s952_s26  ;;  %s1292_s26 = smov %s1046_s10 }
 0x216   : > { %s1293_s27 = smov %s1035_s30  ;;  %20 = sbr.rel (!%p18_p12) target bundleno = 4 (0x4), region = 96 }
 0x21b   :  { %720 = vsyncpa [#allocation3], 1 }
 0x21c   :  { %722 = vsyncpa [#allocation3 + $0x1], 1 }
 0x21d   :  { %723 = vsyncpa [#allocation4], 1 }
 0x21e   :  { %725 = vsyncpa [#allocation4 + $0x1], 1 }

</bundles_post_ra>
